<compile_context>
chip_gen: v7x
topology: tpu7x:2x2x1
jax: 0.10.0
libtpu: 0.0.40
codegen_flags: <defaults>
</compile_context>

<pallas_src>
import functools

import jax
import jax.numpy as jnp
from jax.experimental import pallas as pl
from jax.experimental.pallas import tpu as pltpu


def _round_up(n, m):
    return ((n + m - 1) // m) * m


# ---------------------------------------------------------------------------
# Pallas kernel: one batch tile of  matmul -> SiLU -> matmul [-> +x]  in VMEM.
# ---------------------------------------------------------------------------
def _mlp_kernel(x_ref, w0_ref, b0_ref, w1_ref, b1_ref, o_ref, *, residual):
    x = x_ref[...]                                               # (tb, n_in), input dtype
    # lin0 on the MXU, f32 accumulation; cast only the matmul operand.
    h = jnp.dot(x.astype(w0_ref.dtype), w0_ref[...],
                preferred_element_type=jnp.float32)              # (tb, n_hid) f32
    h = h + b0_ref[...]                                          # f32 bias broadcast
    # SiLU in f32 (EUP sigmoid + VPU mul).
    h = h * jax.nn.sigmoid(h)
    # lin1 on the MXU, f32 accumulation.
    y = jnp.dot(h.astype(w1_ref.dtype), w1_ref[...],
                preferred_element_type=jnp.float32)              # (tb, n_out) f32
    y = y + b1_ref[...]
    if residual:
        y = y + x.astype(jnp.float32)                            # residual from original x
    o_ref[...] = y.astype(o_ref.dtype)


# ---------------------------------------------------------------------------
# One-time parameter preparation (hoisted out of the per-step hot path).
# ---------------------------------------------------------------------------
def prepare_params(w0, b0, w1, b1, compute_dtype=None):
    """w0: [n_in, n_hid]; b0: [n_hid]; w1: [n_hid, n_out]; b1: [n_out].

    compute_dtype: dtype fed to the MXU (bf16 recommended on v6e/v7x; keep the
    default f32 on v5e). Biases / accumulation / SiLU / residual stay f32.
    """
    cd = w0.dtype if compute_dtype is None else compute_dtype
    return dict(
        w0=w0.astype(cd),
        b0=b0.astype(jnp.float32).reshape(1, -1),
        w1=w1.astype(cd),
        b1=b1.astype(jnp.float32).reshape(1, -1),
    )


def _vmem_capacity_bytes():
    try:
        cap = getattr(pltpu.get_tpu_info(), "vmem_capacity_bytes", None)
        if cap:
            return int(cap)
    except Exception:
        pass
    return 64 * 2**20  # conservative fallback (v7x per-TensorCore VMEM)


# ---------------------------------------------------------------------------
# Forward wrapper.
# ---------------------------------------------------------------------------
def mlp_forward(x, params, *, residual=False, tb=None):
    """x: [B, n_in]; params from prepare_params(). Returns [B, n_out]."""
    B, n_in = x.shape
    w0, b0, w1, b1 = params["w0"], params["b0"], params["w1"], params["b1"]
    n_hid = w0.shape[1]
    n_out = w1.shape[1]
    if residual:
        assert n_out == n_in, "residual requires n_outputs == n_inputs"

    out_dtype = x.dtype
    x_it = jnp.dtype(x.dtype).itemsize
    w_it = jnp.dtype(w0.dtype).itemsize
    o_it = jnp.dtype(out_dtype).itemsize

    # ---- batch tile choice ----
    if tb is None:
        if B <= 512:
            tb = _round_up(max(B, 8), 8)          # one tile; step overhead dominates
        else:
            # >=2 grid steps so both v7x TensorCores get work; 256-aligned M
            # for the 256x256 MXU on v6e/v7x; large cap to amortize step cost.
            tb = min(4096, _round_up(pl.cdiv(B, 2), 256))
    tb = max(8, _round_up(min(tb, _round_up(B, 8)), 8))

    # ---- VMEM footprint (feature dims occupy full 128-lane tiles in VMEM) ----
    Kv, Hv, Nv = (_round_up(d, 128) for d in (n_in, n_hid, n_out))
    budget = int(0.85 * _vmem_capacity_bytes())

    def footprint(t):
        return (2 * t * Kv * x_it                 # double-buffered x tiles
                + 2 * t * Nv * o_it               # double-buffered out tiles
                + (Kv * Hv + Hv * Nv) * w_it      # resident single-buffered weights
                + (Hv + Nv) * 4                   # resident f32 biases
                + t * Hv * 4 + t * Nv * 4)        # f32 intermediates

    while footprint(tb) > budget and tb > 256:
        tb = max(256, _round_up(tb // 2, 8))
    need = footprint(tb)
    # TODO(synk): for n_hidden so large that resident weights alone overflow
    # VMEM (esp. v7x's 64 MiB), add a hidden-dim "arbitrary" grid axis with a
    # VMEM f32 accumulator instead of fully-resident weights.
    vmem_limit = int(min(budget, max(32 * 2**20, 2 * need)))

    grid = (pl.cdiv(B, tb),)   # ragged tail handled by Pallas block masking

    cost = pl.CostEstimate(
        flops=2 * B * (n_in * n_hid + n_hid * n_out),
        transcendentals=B * n_hid,
        bytes_accessed=int(B * n_in * x_it
                           + (n_in * n_hid + n_hid * n_out) * w_it
                           + (n_hid + n_out) * 4
                           + B * n_out * o_it),
    )

    # Weights / biases never change across grid steps -> single-buffer them.
    def resident(shape):
        return pl.BlockSpec(shape, lambda i: (0, 0), pipeline_mode=pl.Buffered(1))

    kernel = functools.partial(_mlp_kernel, residual=residual)

    return pl.pallas_call(
        kernel,
        out_shape=jax.ShapeDtypeStruct((B, n_out), out_dtype),
        grid_spec=pl.GridSpec(
            grid=grid,
            in_specs=[
                pl.BlockSpec((tb, n_in), lambda i: (i, 0)),   # x streamed over batch
                resident((n_in, n_hid)),                      # W0
                resident((1, n_hid)),                         # b0
                resident((n_hid, n_out)),                     # W1
                resident((1, n_out)),                         # b1
            ],
            out_specs=pl.BlockSpec((tb, n_out), lambda i: (i, 0)),
        ),
        compiler_params=pltpu.CompilerParams(
            dimension_semantics=("parallel",),
            vmem_limit_bytes=vmem_limit,
        ),
        cost_estimate=cost,
    )(x, w0, b0, w1, b1)


# ---------------------------------------------------------------------------
# Deterministic parameter init matching the module's __init__ semantics:
#   orthogonal_(lin0.weight, 0.5), zeros_(lin0.bias)
#   orthogonal_(lin1.weight, init_gain), zeros_(lin1.bias)
# PyTorch Linear weight is [out, in]; we build it that way then transpose so
# the kernel computes plain x @ W (+ b) == PyTorch's x @ W.T + b.
# ---------------------------------------------------------------------------
def init_params(key, n_inputs, n_hidden, n_outputs, init_gain=0.5,
                dtype=jnp.float32):
    k0, k1 = jax.random.split(key)
    ortho = jax.nn.initializers.orthogonal
    w0_torch = ortho(scale=0.5)(k0, (n_hidden, n_inputs), dtype)       # [out, in]
    w1_torch = ortho(scale=init_gain)(k1, (n_outputs, n_hidden), dtype)
    return dict(
        w0=w0_torch.T,                         # [in, hid]
        b0=jnp.zeros((n_hidden,), dtype),
        w1=w1_torch.T,                         # [hid, out]
        b1=jnp.zeros((n_outputs,), dtype),
    )


def mlp_reference(x, p, residual=False):
    h = x @ p["w0"] + p["b0"]
    h = h * jax.nn.sigmoid(h)
    y = h @ p["w1"] + p["b1"]
    if residual:
        y = y + x
    return y


if __name__ == "__main__":
    key = jax.random.PRNGKey(0)
    kx, kp, kx2 = jax.random.split(key, 3)

    # --- small shapes implied by the module: n_inputs=16, n_hidden=32, n_outputs=8 ---
    B, n_in, n_hid, n_out = 8, 16, 32, 8
    raw = init_params(kp, n_in, n_hid, n_out, init_gain=0.5)
    prepared = prepare_params(raw["w0"], raw["b0"], raw["w1"], raw["b1"])
    x = jax.random.normal(kx, (B, n_in), jnp.float32)

    # f32 path (exact module semantics), non-residual
    y = mlp_forward(x, prepared, residual=False)
    y = jax.block_until_ready(y)
    y_ref = mlp_reference(x, raw, residual=False)
    assert y.shape == (B, n_out)
    assert jnp.allclose(y, y_ref, atol=1e-5, rtol=1e-5)

    # residual path (requires n_outputs == n_inputs)
    raw_r = init_params(kp, n_in, n_hid, n_in, init_gain=0.5)
    prep_r = prepare_params(raw_r["w0"], raw_r["b0"], raw_r["w1"], raw_r["b1"])
    yr = mlp_forward(x, prep_r, residual=True)
    yr = jax.block_until_ready(yr)
    yr_ref = mlp_reference(x, raw_r, residual=True)
    assert jnp.allclose(yr, yr_ref, atol=1e-5, rtol=1e-5)

    # ragged multi-tile batch, f32, explicit small tile (exercises partial tail)
    B2 = 1000
    x2 = jax.random.normal(kx2, (B2, n_in), jnp.float32)
    y2 = mlp_forward(x2, prepared, residual=False, tb=256)
    y2 = jax.block_until_ready(y2)
    y2_ref = mlp_reference(x2, raw, residual=False)
    assert y2.shape == (B2, n_out)
    assert jnp.allclose(y2, y2_ref, atol=1e-5, rtol=1e-5)

    # bf16-weight MXU path (v6e/v7x perf config); x stays f32, residual unaffected
    prep_bf16 = prepare_params(raw["w0"], raw["b0"], raw["w1"], raw["b1"],
                               compute_dtype=jnp.bfloat16)
    y3 = mlp_forward(x2, prep_bf16, residual=False)
    y3 = jax.block_until_ready(y3)
    assert jnp.allclose(y3, y2_ref, atol=5e-2, rtol=5e-2)

    print("KERNEL_OK")
</pallas_src>

<mosaic_0001>
module attributes {stable_mosaic.version = 11 : i64} {
  func.func @_mlp_kernel(%arg0: i32, %arg1: memref<8x16xf32, #tpu.memory_space<vmem>>, %arg2: memref<16x32xf32, #tpu.memory_space<vmem>>, %arg3: memref<1x32xf32, #tpu.memory_space<vmem>>, %arg4: memref<32x8xf32, #tpu.memory_space<vmem>>, %arg5: memref<1x8xf32, #tpu.memory_space<vmem>>, %arg6: memref<8x8xf32, #tpu.memory_space<vmem>>) attributes {dimension_semantics = [#tpu.dimension_semantics<parallel>], iteration_bounds = array<i64: 1>, scalar_prefetch = 0 : i64, scratch_operands = 0 : i64, tpu.core_type = #tpu.core_type<tc>, window_params = [{transform_indices = @transform_0, window_bounds = array<i64: 8, 16>}, {pipeline_mode = #tpu.pipeline_mode<synchronous>, transform_indices = @transform_1, window_bounds = array<i64: 16, 32>}, {pipeline_mode = #tpu.pipeline_mode<synchronous>, transform_indices = @transform_2, window_bounds = array<i64: 1, 32>}, {pipeline_mode = #tpu.pipeline_mode<synchronous>, transform_indices = @transform_3, window_bounds = array<i64: 32, 8>}, {pipeline_mode = #tpu.pipeline_mode<synchronous>, transform_indices = @transform_4, window_bounds = array<i64: 1, 8>}, {transform_indices = @transform_5, window_bounds = array<i64: 8, 8>}]} {
    %c0 = arith.constant 0 : index
    %c0_0 = arith.constant 0 : index
    %0 = vector.load %arg1[%c0, %c0_0] : memref<8x16xf32, #tpu.memory_space<vmem>>, vector<8x16xf32>
    %c0_1 = arith.constant 0 : index
    %c0_2 = arith.constant 0 : index
    %1 = vector.load %arg2[%c0_1, %c0_2] : memref<16x32xf32, #tpu.memory_space<vmem>>, vector<16x32xf32>
    %cst = arith.constant dense<0.000000e+00> : vector<8x32xf32>
    %2 = tpu.matmul %0, %1, %cst {dimension_numbers = #tpu.dot_dimension_numbers<[1], [0], [0], [1], [0, 0, 1, 1], [], []>} : vector<8x16xf32>, vector<16x32xf32>, vector<8x32xf32> -> vector<8x32xf32>
    %c0_3 = arith.constant 0 : index
    %c0_4 = arith.constant 0 : index
    %3 = vector.load %arg3[%c0_3, %c0_4] : memref<1x32xf32, #tpu.memory_space<vmem>>, vector<1x32xf32>
    %4 = vector.broadcast %3 : vector<1x32xf32> to vector<8x32xf32>
    %5 = arith.addf %2, %4 : vector<8x32xf32>
    %6 = arith.negf %5 : vector<8x32xf32>
    %7 = math.exp %6 : vector<8x32xf32>
    %cst_5 = arith.constant 1.000000e+00 : f32
    %8 = vector.broadcast %cst_5 : f32 to vector<8x32xf32>
    %9 = arith.addf %8, %7 : vector<8x32xf32>
    %10 = arith.divf %8, %9 : vector<8x32xf32>
    %11 = arith.mulf %5, %10 : vector<8x32xf32>
    %c0_6 = arith.constant 0 : index
    %c0_7 = arith.constant 0 : index
    %12 = vector.load %arg4[%c0_6, %c0_7] : memref<32x8xf32, #tpu.memory_space<vmem>>, vector<32x8xf32>
    %cst_8 = arith.constant dense<0.000000e+00> : vector<8x8xf32>
    %13 = tpu.matmul %11, %12, %cst_8 {dimension_numbers = #tpu.dot_dimension_numbers<[1], [0], [0], [1], [0, 0, 1, 1], [], []>} : vector<8x32xf32>, vector<32x8xf32>, vector<8x8xf32> -> vector<8x8xf32>
    %c0_9 = arith.constant 0 : index
    %c0_10 = arith.constant 0 : index
    %14 = vector.load %arg5[%c0_9, %c0_10] : memref<1x8xf32, #tpu.memory_space<vmem>>, vector<1x8xf32>
    %15 = vector.broadcast %14 : vector<1x8xf32> to vector<8x8xf32>
    %16 = arith.addf %13, %15 : vector<8x8xf32>
    %c0_11 = arith.constant 0 : index
    %c0_12 = arith.constant 0 : index
    %17 = vector.load %arg6[%c0_11, %c0_12] : memref<8x8xf32, #tpu.memory_space<vmem>>, vector<8x8xf32>
    tpu.vector_store %arg6[%c0_11, %c0_12], %16 {strides = array<i32>} : memref<8x8xf32, #tpu.memory_space<vmem>>, vector<8x8xf32>,
    return
  }
  func.func @transform_0(%arg0: i32) -> (i32, i32) {
    %c0_i32 = arith.constant 0 : i32
    %c0_i32_0 = arith.constant 0 : i32
    return %arg0, %c0_i32 : i32, i32
  }
  func.func @transform_1(%arg0: i32) -> (i32, i32) {
    %c0_i32 = arith.constant 0 : i32
    %c0_i32_0 = arith.constant 0 : i32
    %c0_i32_1 = arith.constant 0 : i32
    return %c0_i32, %c0_i32_0 : i32, i32
  }
  func.func @transform_2(%arg0: i32) -> (i32, i32) {
    %c0_i32 = arith.constant 0 : i32
    %c0_i32_0 = arith.constant 0 : i32
    %c0_i32_1 = arith.constant 0 : i32
    return %c0_i32, %c0_i32_0 : i32, i32
  }
  func.func @transform_3(%arg0: i32) -> (i32, i32) {
    %c0_i32 = arith.constant 0 : i32
    %c0_i32_0 = arith.constant 0 : i32
    %c0_i32_1 = arith.constant 0 : i32
    return %c0_i32, %c0_i32_0 : i32, i32
  }
  func.func @transform_4(%arg0: i32) -> (i32, i32) {
    %c0_i32 = arith.constant 0 : i32
    %c0_i32_0 = arith.constant 0 : i32
    %c0_i32_1 = arith.constant 0 : i32
    return %c0_i32, %c0_i32_0 : i32, i32
  }
  func.func @transform_5(%arg0: i32) -> (i32, i32) {
    %c0_i32 = arith.constant 0 : i32
    %c0_i32_0 = arith.constant 0 : i32
    return %arg0, %c0_i32 : i32, i32
  }
}

</mosaic_0001>

<bundles_post_ra>
// kernel: tpu_custom_call.1
= control target key start
LH: loop header
LB: loop body
LE: loop exit
PB: predicated region body
PF: predicated region fallthrough
CT: control target
= control target key end

     0   :  { %v285_v2 = vmov 0.0|0.0   ;;  %vm286_vm0 = vmmov 0   ;;  %v287_v4 = vmov 0.0   ;;  %s358_s0 = inlined_call_operand.vmem [shape: f32[8,16], index: 0, kind: input, shape index: {}]   ;;  %s359_s1 = inlined_call_operand.vmem [shape: f32[16,32], index: 1, kind: input, shape index: {}]   ;;  %s360_s2 = inlined_call_operand.vmem [shape: f32[1,32], index: 2, kind: input, shape index: {}]   ;;  %s361_s3 = inlined_call_operand.vmem [shape: f32[32,8], index: 3, kind: input, shape index: {}]   ;;  %s362_s4 = inlined_call_operand.vmem [shape: f32[1,8], index: 4, kind: input, shape index: {}]   ;;  %s363_s5 = inlined_call_operand.hbm [shape: f32[8,8], index: 5, kind: output, shape index: {}]  }
   0x1   :  { %v22_v0 = vld [vmem:[%s359_s1] sm:$0xff]  ;;  %v23_v1 = vld [vmem:[%s359_s1 + $0x8] sm:$0xff]  ;;  %244 = vmatprep.subr.bf16.mxu0 %v285_v2  ;;  %230 = vmatprep.mubr.msk.f32.mxu0 %vm286_vm0, %v287_v4 }
   0x2   :  { %v245_v3 = vpack.c.bf16 %v23_v1, %v22_v0 }
   0x3   :  { %10 = vsyncpa [#allocation3], 0  ;;  %247 = vmatprep.subr.bf16.mxu1 %v285_v2  ;;  %241 = vmatprep.mubr.msk.f32.mxu1 %vm286_vm0, %v287_v4  ;;  %v21_v5 = vld [vmem:[%s358_s0] sm:$0xff]  ;;  %vm31_vm1 = vcmask 130048   ;;  %v113_v7 = vld [vmem:[%s361_s3 + $0x8] sm:$0xff]  ;;  %vm123_vm2 = vcmask 261120  }
   0x4   :  { %246 = vmatpush3.bf16.msra.mxu0 %v245_v3  ;;  %v112_v6 = vld [vmem:[%s361_s3] sm:$0xff]  ;;  %v114_v9 = vld [vmem:[%s361_s3 + $0x10] sm:$0xff]  ;;  %v115_v10 = vld [vmem:[%s361_s3 + $0x18] sm:$0xff]  ;;  %s288_s8 = smov [#allocation2]   ;;  %vm197_vm3 = vcmask 64512  }
   0x5   :  { %v248_v8 = vpack.c.bf16 %v113_v7, %v112_v6  ;;  %v251_v11 = vpack.c.bf16 %v115_v10, %v114_v9  ;;  %v213_v12 = vld [vmem:[%s360_s2] ss:$0 sm:$0xff]  ;;  %s205_s9 = sshll.u32 %s288_s8, 4  ;;  %s206_s9 = int_to_ptr.vmem [resolvable:$true] %s205_s9 }
   0x6   :  { %v216_v21 = vld [vmem:[%s362_s4] ss:$0 sm:$0xff]  ;;  %s261_s2 = scalar_lea.vmem %s206_s9, 128  ;;  %p266_p1 = scmp.lt.s32.totalorder %s206_s9, %s206_s9 }
   0x7   :  { %231 = vmatmul.mubr.msk.f32.vlgmr.msra.gmra.mrb[0].mxu0 %vm31_vm1, %v21_v5  ;;  %249 = vmatpush3.bf16.msra.mxu1 %v248_v8  ;;  %p262_p0 = scmp.ne.s32.totalorder %s206_s9, %s261_s2  ;;  %p267_p2 = scmp.lt.s32.totalorder %s261_s2, %s261_s2 }
   0x8   :  { %250 = vmatprep.subr.bf16.mxu1 %v285_v2 }
   0x9   :  { %p268_p3 = por %p267_p2, %p266_p1 }
   0xb   :  { %252 = vmatpush3.bf16.msra.mxu1 %v251_v11  ;;  %p269_p4 = pnand %p268_p3, %p262_p0 }
  0xda   :  { %v101_v13 = vpop.f32.mrb[0].mxu0 }
  0xdb   :  { %v102_v14 = vadd.f32 %v213_v12, %v101_v13  ;;  %v232_v15 = vpop.f32.mrb[1].mxu0 }
  0xdd   :  { %v215_v16 = vmul.f32 -1.442695, %v102_v14 }
  0xdf   :  { %257 = vpow2.f32 %v215_v16 }
  0xe9   :  { %v258_v17 = vpop.eup %257 }
  0xea   :  { %v108_v18 = vadd.f32 1.0, %v258_v17 }
  0xec   :  { %259 = vrcp.f32 %v108_v18 }
  0xf6   :  { %v260_v19 = vpop.eup %259 }
  0xf7   :  { %v111_v20 = vmul.f32 %v260_v19, %v102_v14 }
  0xf9   :  { %242 = vmatmul.mubr.msk.f32.vlgmr.msra.gmra.mrb[0].mxu1 %vm123_vm2, %v111_v20 }
 0x1cc   :  { %v193_v22 = vpop.f32.mrb[0].mxu1 }
 0x1cd   :  { %v194_v23 = vadd.f32 %v216_v21, %v193_v22  ;;  %v243_v24 = vpop.f32.mrb[1].mxu1 }
 0x1cf   :  { %198 = vst.msk [vmem:[#allocation2] sm:$0xff] %vm197_vm3, %v194_v23 }
 0x1d0   :  { %272 = shalt.err (!%p269_p4)
}
 0x1d1   :  { %s273_s12 = scalar_lea.hbm %s363_s5, 128 }
 0x1d2   :  { %p274_p5 = scmp.ne.s32.totalorder %s363_s5, %s273_s12  ;;  %p277_p6 = scmp.lt.u32.totalorder %s273_s12, %s363_s5 }
 0x1d4   :  { %p279_p7 = pnand %p277_p6, %p274_p5 }
 0x1d6   :  { %282 = shalt.err (!%p279_p7)
}
 0x1d7   :  { %208 = dma.vmem_to_hbm [thread:$0]  %s206_s9, 128, %s363_s5, [#allocation3]  }
 0x1d8   :  { %283 = dma.done.wait [#allocation3], 128  }
 0x1d9   :  { %284 = vsyncadd [#allocation3], 4294967168 }
 0x1da   :  { %212 = vsyncpa [#allocation3], 1 }

</bundles_post_ra>
